<compile_context>
chip_gen: v7x
topology: tpu7x:2x2x1
jax: 0.10.0
libtpu: 0.0.40
codegen_flags: <defaults>
</compile_context>

<pallas_src>
import functools

import jax
import jax.numpy as jnp
from jax.experimental import pallas as pl
from jax.experimental.pallas import tpu as pltpu

LANE = 128      # vreg lane width: feature dims padded to a multiple of this
SUBLANE = 8     # f32 sublane tile: batch padded to a multiple of this
MAX_TB = 256    # max batch rows per grid step (parallel axis for megacore)


# ---------------------------------------------------------------------------
# Fused kernel: whole MLP forward; every tap written into one output slab
# ---------------------------------------------------------------------------
def _fused_mlp_kernel(num_hidden, tap_pdims, x_ref, *refs):
    """refs = [w0, b0, (w_i, b_i) * num_hidden, wf, bf, out_slab_ref].

    All shapes are pre-padded: x (TB, 128k), weights (128k, 128m), biases
    (1, 128m).  Activations never leave VMEM/vregs except as the packed taps,
    each stored as a full-lane 128-wide column chunk of the output slab.
    """
    out_ref = refs[-1]
    wb = refs[:-1]

    # Static column offsets (each tap width is a multiple of 128 -> lane-dense).
    offs = []
    c = 0
    for pw in tap_pdims:
        offs.append(c)
        c += pw

    x = x_ref[...]

    # initial linear
    x = jnp.dot(x, wb[0][...], preferred_element_type=jnp.float32) + wb[1][...]
    out_ref[:, offs[0]:offs[0] + tap_pdims[0]] = x

    ti = 1
    for li in range(num_hidden):
        w = wb[2 + 2 * li][...]
        b = wb[3 + 2 * li][...]
        r = jnp.maximum(x, 0.0)                               # relu tap
        out_ref[:, offs[ti]:offs[ti] + tap_pdims[ti]] = r
        x = jnp.dot(r, w, preferred_element_type=jnp.float32) + b
        out_ref[:, offs[ti + 1]:offs[ti + 1] + tap_pdims[ti + 1]] = x
        ti += 2

    # final linear (no relu before it — matches the PyTorch forward)
    x = jnp.dot(x, wb[-2][...], preferred_element_type=jnp.float32) + wb[-1][...]
    out_ref[:, offs[-1]:offs[-1] + tap_pdims[-1]] = x


# ---------------------------------------------------------------------------
# Padding helpers
# ---------------------------------------------------------------------------
def _ceil_to(v, m):
    return ((v + m - 1) // m) * m


def _pad2d(a, rows, cols):
    r, c = a.shape
    return jnp.pad(a, ((0, rows - r), (0, cols - c)))


# ---------------------------------------------------------------------------
# Jitted forward factory: pad x, one pallas_call, slice taps — all fused
# ---------------------------------------------------------------------------
def _make_forward(num_hidden, dims, pdims):
    """dims/pdims: true / 128-padded feature sizes [Din, d1, ..., dout]."""
    # Tap widths in forward order: initial, (relu, linear) per hidden, final.
    tap_dims = [dims[1]]
    tap_pdims = [pdims[1]]
    for li in range(num_hidden):
        tap_dims += [dims[li + 1], dims[li + 2]]
        tap_pdims += [pdims[li + 1], pdims[li + 2]]
    tap_dims.append(dims[-1])
    tap_pdims.append(pdims[-1])
    tap_pdims = tuple(tap_pdims)

    slab_w = sum(tap_pdims)
    offs = []
    c = 0
    for pw in tap_pdims:
        offs.append(c)
        c += pw

    kernel = functools.partial(_fused_mlp_kernel, num_hidden, tap_pdims)

    def fwd(x, *flat_padded_params):
        B = x.shape[0]
        bp0 = _ceil_to(B, SUBLANE)
        TB = min(bp0, MAX_TB)              # batch tile (parallel grid axis)
        Bp = _ceil_to(bp0, TB)
        nb = Bp // TB

        xp = _pad2d(x, Bp, pdims[0])

        in_specs = [pl.BlockSpec((TB, pdims[0]), lambda i: (i, 0))]
        # Weights/biases: full array per step, same block index -> stay resident.
        for p in flat_padded_params:
            in_specs.append(pl.BlockSpec(p.shape, lambda i: (0, 0)))

        slab = pl.pallas_call(
            kernel,
            out_shape=jax.ShapeDtypeStruct((Bp, slab_w), jnp.float32),
            grid=(nb,),
            in_specs=in_specs,
            out_specs=pl.BlockSpec((TB, slab_w), lambda i: (i, 0)),
            compiler_params=pltpu.CompilerParams(
                dimension_semantics=("parallel",),
                vmem_limit_bytes=32 * 1024 * 1024,
            ),
        )(xp, *flat_padded_params)

        # Lane-slice the packed taps back to true (B, dout) shapes (fused by jit).
        return tuple(
            slab[:B, o:o + d] for o, d in zip(offs, tap_dims)
        )

    return jax.jit(fwd)


# ---------------------------------------------------------------------------
# SimpleNN in JAX (parameters built deterministically, forward uses Pallas)
# ---------------------------------------------------------------------------
class SimpleNN:
    def __init__(self, input_size, hidden_size, num_layers, output_size, key):
        assert num_layers >= 2, "SimpleNN requires num_layers >= 2"
        layer_dims = (
            [(input_size, hidden_size)]
            + [(hidden_size, hidden_size)] * (num_layers - 2)
            + [(hidden_size, output_size)]
        )
        self.params = []
        for (din, dout) in layer_dims:
            key, wk, bk = jax.random.split(key, 3)
            # Deterministic init mimicking PyTorch's uniform(-1/sqrt(fan_in), ...)
            bound = 1.0 / jnp.sqrt(jnp.float32(din))
            w = jax.random.uniform(
                wk, (din, dout), jnp.float32, minval=-bound, maxval=bound
            )
            b = jax.random.uniform(
                bk, (1, dout), jnp.float32, minval=-bound, maxval=bound
            )
            self.params.append((w, b))

        # Pad weights/biases ONCE (hoisted out of the per-call path).
        dims = [input_size] + [w.shape[1] for (w, _) in self.params]
        pdims = [_ceil_to(d, LANE) for d in dims]
        flat = []
        for i, (w, b) in enumerate(self.params):
            flat.append(_pad2d(w, pdims[i], pdims[i + 1]))
            flat.append(_pad2d(b, 1, pdims[i + 1]))
        self._flat_padded_params = tuple(
            jax.device_put(p) for p in flat
        )

        num_hidden = len(self.params) - 2
        self._fwd = _make_forward(num_hidden, dims, pdims)

    def __call__(self, x):
        return self._fwd(x, *self._flat_padded_params)


# ---------------------------------------------------------------------------
# Pure-JAX reference for a sanity check
# ---------------------------------------------------------------------------
def reference_forward(params, x):
    outputs = []
    w0, b0 = params[0]
    x = x @ w0 + b0
    outputs.append(x)
    for (w, b) in params[1:-1]:
        r = jnp.maximum(x, 0.0)
        outputs.append(r)
        x = r @ w + b
        outputs.append(x)
    wf, bf = params[-1]
    x = x @ wf + bf
    outputs.append(x)
    return tuple(outputs)


if __name__ == "__main__":
    key = jax.random.PRNGKey(0)
    key, pkey, xkey = jax.random.split(key, 3)

    input_size, hidden_size, num_layers, output_size = 16, 32, 4, 8
    batch = 8

    model = SimpleNN(input_size, hidden_size, num_layers, output_size, pkey)
    x = jax.random.normal(xkey, (batch, input_size), jnp.float32)

    outs = model(x)
    outs = jax.block_until_ready(outs)

    refs = reference_forward(model.params, x)
    assert len(outs) == len(refs) == 1 + 2 * (num_layers - 2) + 1
    for o, r in zip(outs, refs):
        assert o.shape == r.shape and o.dtype == r.dtype
        assert jnp.allclose(o, r, atol=1e-5, rtol=1e-5)

    print("KERNEL_OK")
</pallas_src>

<mosaic_0001>
module attributes {stable_mosaic.version = 11 : i64} {
  func.func @_fused_mlp_kernel(%arg0: i32, %arg1: memref<8x128xf32, #tpu.memory_space<vmem>>, %arg2: memref<128x128xf32, #tpu.memory_space<vmem>>, %arg3: memref<1x128xf32, #tpu.memory_space<vmem>>, %arg4: memref<128x128xf32, #tpu.memory_space<vmem>>, %arg5: memref<1x128xf32, #tpu.memory_space<vmem>>, %arg6: memref<128x128xf32, #tpu.memory_space<vmem>>, %arg7: memref<1x128xf32, #tpu.memory_space<vmem>>, %arg8: memref<128x128xf32, #tpu.memory_space<vmem>>, %arg9: memref<1x128xf32, #tpu.memory_space<vmem>>, %arg10: memref<8x768xf32, #tpu.memory_space<vmem>>) attributes {dimension_semantics = [#tpu.dimension_semantics<parallel>], iteration_bounds = array<i64: 1>, scalar_prefetch = 0 : i64, scratch_operands = 0 : i64, tpu.core_type = #tpu.core_type<tc>, window_params = [{transform_indices = @transform_0, window_bounds = array<i64: 8, 128>}, {pipeline_mode = #tpu.pipeline_mode<synchronous>, transform_indices = @transform_1, window_bounds = array<i64: 128, 128>}, {pipeline_mode = #tpu.pipeline_mode<synchronous>, transform_indices = @transform_2, window_bounds = array<i64: 1, 128>}, {pipeline_mode = #tpu.pipeline_mode<synchronous>, transform_indices = @transform_3, window_bounds = array<i64: 128, 128>}, {pipeline_mode = #tpu.pipeline_mode<synchronous>, transform_indices = @transform_4, window_bounds = array<i64: 1, 128>}, {pipeline_mode = #tpu.pipeline_mode<synchronous>, transform_indices = @transform_5, window_bounds = array<i64: 128, 128>}, {pipeline_mode = #tpu.pipeline_mode<synchronous>, transform_indices = @transform_6, window_bounds = array<i64: 1, 128>}, {pipeline_mode = #tpu.pipeline_mode<synchronous>, transform_indices = @transform_7, window_bounds = array<i64: 128, 128>}, {pipeline_mode = #tpu.pipeline_mode<synchronous>, transform_indices = @transform_8, window_bounds = array<i64: 1, 128>}, {transform_indices = @transform_9, window_bounds = array<i64: 8, 768>}]} {
    %c0 = arith.constant 0 : index
    %c0_0 = arith.constant 0 : index
    %0 = vector.load %arg1[%c0, %c0_0] : memref<8x128xf32, #tpu.memory_space<vmem>>, vector<8x128xf32>
    %c0_1 = arith.constant 0 : index
    %c0_2 = arith.constant 0 : index
    %1 = vector.load %arg2[%c0_1, %c0_2] : memref<128x128xf32, #tpu.memory_space<vmem>>, vector<128x128xf32>
    %cst = arith.constant dense<0.000000e+00> : vector<8x128xf32>
    %2 = tpu.matmul %0, %1, %cst {dimension_numbers = #tpu.dot_dimension_numbers<[1], [0], [0], [1], [0, 0, 1, 1], [], []>} : vector<8x128xf32>, vector<128x128xf32>, vector<8x128xf32> -> vector<8x128xf32>
    %c0_3 = arith.constant 0 : index
    %c0_4 = arith.constant 0 : index
    %3 = vector.load %arg3[%c0_3, %c0_4] : memref<1x128xf32, #tpu.memory_space<vmem>>, vector<1x128xf32>
    %4 = vector.broadcast %3 : vector<1x128xf32> to vector<8x128xf32>
    %5 = arith.addf %2, %4 : vector<8x128xf32>
    %c0_5 = arith.constant 0 : index
    %c0_6 = arith.constant 0 : index
    %6 = vector.load %arg10[%c0_5, %c0_6] : memref<8x768xf32, #tpu.memory_space<vmem>>, vector<8x128xf32>
    tpu.vector_store %arg10[%c0_5, %c0_6], %5 {strides = array<i32>} : memref<8x768xf32, #tpu.memory_space<vmem>>, vector<8x128xf32>,
    %c0_7 = arith.constant 0 : index
    %c0_8 = arith.constant 0 : index
    %7 = vector.load %arg4[%c0_7, %c0_8] : memref<128x128xf32, #tpu.memory_space<vmem>>, vector<128x128xf32>
    %c0_9 = arith.constant 0 : index
    %c0_10 = arith.constant 0 : index
    %8 = vector.load %arg5[%c0_9, %c0_10] : memref<1x128xf32, #tpu.memory_space<vmem>>, vector<1x128xf32>
    %cst_11 = arith.constant 0.000000e+00 : f32
    %9 = vector.broadcast %cst_11 : f32 to vector<8x128xf32>
    %10 = arith.maximumf %5, %9 : vector<8x128xf32>
    %c0_12 = arith.constant 0 : index
    %c128 = arith.constant 128 : index
    %11 = vector.load %arg10[%c0_12, %c128] : memref<8x768xf32, #tpu.memory_space<vmem>>, vector<8x128xf32>
    tpu.vector_store %arg10[%c0_12, %c128], %10 {strides = array<i32>} : memref<8x768xf32, #tpu.memory_space<vmem>>, vector<8x128xf32>,
    %cst_13 = arith.constant dense<0.000000e+00> : vector<8x128xf32>
    %12 = tpu.matmul %10, %7, %cst_13 {dimension_numbers = #tpu.dot_dimension_numbers<[1], [0], [0], [1], [0, 0, 1, 1], [], []>} : vector<8x128xf32>, vector<128x128xf32>, vector<8x128xf32> -> vector<8x128xf32>
    %13 = vector.broadcast %8 : vector<1x128xf32> to vector<8x128xf32>
    %14 = arith.addf %12, %13 : vector<8x128xf32>
    %c0_14 = arith.constant 0 : index
    %c256 = arith.constant 256 : index
    %15 = vector.load %arg10[%c0_14, %c256] : memref<8x768xf32, #tpu.memory_space<vmem>>, vector<8x128xf32>
    tpu.vector_store %arg10[%c0_14, %c256], %14 {strides = array<i32>} : memref<8x768xf32, #tpu.memory_space<vmem>>, vector<8x128xf32>,
    %c0_15 = arith.constant 0 : index
    %c0_16 = arith.constant 0 : index
    %16 = vector.load %arg6[%c0_15, %c0_16] : memref<128x128xf32, #tpu.memory_space<vmem>>, vector<128x128xf32>
    %c0_17 = arith.constant 0 : index
    %c0_18 = arith.constant 0 : index
    %17 = vector.load %arg7[%c0_17, %c0_18] : memref<1x128xf32, #tpu.memory_space<vmem>>, vector<1x128xf32>
    %cst_19 = arith.constant 0.000000e+00 : f32
    %18 = vector.broadcast %cst_19 : f32 to vector<8x128xf32>
    %19 = arith.maximumf %14, %18 : vector<8x128xf32>
    %c0_20 = arith.constant 0 : index
    %c384 = arith.constant 384 : index
    %20 = vector.load %arg10[%c0_20, %c384] : memref<8x768xf32, #tpu.memory_space<vmem>>, vector<8x128xf32>
    tpu.vector_store %arg10[%c0_20, %c384], %19 {strides = array<i32>} : memref<8x768xf32, #tpu.memory_space<vmem>>, vector<8x128xf32>,
    %cst_21 = arith.constant dense<0.000000e+00> : vector<8x128xf32>
    %21 = tpu.matmul %19, %16, %cst_21 {dimension_numbers = #tpu.dot_dimension_numbers<[1], [0], [0], [1], [0, 0, 1, 1], [], []>} : vector<8x128xf32>, vector<128x128xf32>, vector<8x128xf32> -> vector<8x128xf32>
    %22 = vector.broadcast %17 : vector<1x128xf32> to vector<8x128xf32>
    %23 = arith.addf %21, %22 : vector<8x128xf32>
    %c0_22 = arith.constant 0 : index
    %c512 = arith.constant 512 : index
    %24 = vector.load %arg10[%c0_22, %c512] : memref<8x768xf32, #tpu.memory_space<vmem>>, vector<8x128xf32>
    tpu.vector_store %arg10[%c0_22, %c512], %23 {strides = array<i32>} : memref<8x768xf32, #tpu.memory_space<vmem>>, vector<8x128xf32>,
    %c0_23 = arith.constant 0 : index
    %c0_24 = arith.constant 0 : index
    %25 = vector.load %arg8[%c0_23, %c0_24] : memref<128x128xf32, #tpu.memory_space<vmem>>, vector<128x128xf32>
    %cst_25 = arith.constant dense<0.000000e+00> : vector<8x128xf32>
    %26 = tpu.matmul %23, %25, %cst_25 {dimension_numbers = #tpu.dot_dimension_numbers<[1], [0], [0], [1], [0, 0, 1, 1], [], []>} : vector<8x128xf32>, vector<128x128xf32>, vector<8x128xf32> -> vector<8x128xf32>
    %c0_26 = arith.constant 0 : index
    %c0_27 = arith.constant 0 : index
    %27 = vector.load %arg9[%c0_26, %c0_27] : memref<1x128xf32, #tpu.memory_space<vmem>>, vector<1x128xf32>
    %28 = vector.broadcast %27 : vector<1x128xf32> to vector<8x128xf32>
    %29 = arith.addf %26, %28 : vector<8x128xf32>
    %c0_28 = arith.constant 0 : index
    %c640 = arith.constant 640 : index
    %30 = vector.load %arg10[%c0_28, %c640] : memref<8x768xf32, #tpu.memory_space<vmem>>, vector<8x128xf32>
    tpu.vector_store %arg10[%c0_28, %c640], %29 {strides = array<i32>} : memref<8x768xf32, #tpu.memory_space<vmem>>, vector<8x128xf32>,
    return
  }
  func.func @transform_0(%arg0: i32) -> (i32, i32) {
    %c0_i32 = arith.constant 0 : i32
    %c0_i32_0 = arith.constant 0 : i32
    return %arg0, %c0_i32 : i32, i32
  }
  func.func @transform_1(%arg0: i32) -> (i32, i32) {
    %c0_i32 = arith.constant 0 : i32
    %c0_i32_0 = arith.constant 0 : i32
    %c0_i32_1 = arith.constant 0 : i32
    return %c0_i32, %c0_i32_0 : i32, i32
  }
  func.func @transform_2(%arg0: i32) -> (i32, i32) {
    %c0_i32 = arith.constant 0 : i32
    %c0_i32_0 = arith.constant 0 : i32
    %c0_i32_1 = arith.constant 0 : i32
    return %c0_i32, %c0_i32_0 : i32, i32
  }
  func.func @transform_3(%arg0: i32) -> (i32, i32) {
    %c0_i32 = arith.constant 0 : i32
    %c0_i32_0 = arith.constant 0 : i32
    %c0_i32_1 = arith.constant 0 : i32
    return %c0_i32, %c0_i32_0 : i32, i32
  }
  func.func @transform_4(%arg0: i32) -> (i32, i32) {
    %c0_i32 = arith.constant 0 : i32
    %c0_i32_0 = arith.constant 0 : i32
    %c0_i32_1 = arith.constant 0 : i32
    return %c0_i32, %c0_i32_0 : i32, i32
  }
  func.func @transform_5(%arg0: i32) -> (i32, i32) {
    %c0_i32 = arith.constant 0 : i32
    %c0_i32_0 = arith.constant 0 : i32
    %c0_i32_1 = arith.constant 0 : i32
    return %c0_i32, %c0_i32_0 : i32, i32
  }
  func.func @transform_6(%arg0: i32) -> (i32, i32) {
    %c0_i32 = arith.constant 0 : i32
    %c0_i32_0 = arith.constant 0 : i32
    %c0_i32_1 = arith.constant 0 : i32
    return %c0_i32, %c0_i32_0 : i32, i32
  }
  func.func @transform_7(%arg0: i32) -> (i32, i32) {
    %c0_i32 = arith.constant 0 : i32
    %c0_i32_0 = arith.constant 0 : i32
    %c0_i32_1 = arith.constant 0 : i32
    return %c0_i32, %c0_i32_0 : i32, i32
  }
  func.func @transform_8(%arg0: i32) -> (i32, i32) {
    %c0_i32 = arith.constant 0 : i32
    %c0_i32_0 = arith.constant 0 : i32
    %c0_i32_1 = arith.constant 0 : i32
    return %c0_i32, %c0_i32_0 : i32, i32
  }
  func.func @transform_9(%arg0: i32) -> (i32, i32) {
    %c0_i32 = arith.constant 0 : i32
    %c0_i32_0 = arith.constant 0 : i32
    return %arg0, %c0_i32 : i32, i32
  }
}

</mosaic_0001>

<bundles_post_ra>
// kernel: fwd.1
= control target key start
LH: loop header
LB: loop body
LE: loop exit
PB: predicated region body
PF: predicated region fallthrough
CT: control target
= control target key end

     0   :  { %14 = vsyncpa [#allocation3], 0  ;;  %s1092_s0 = inlined_call_operand.vmem [shape: f32[8,128], index: 0, kind: input, shape index: {}]   ;;  %s1093_s1 = inlined_call_operand.hbm [shape: f32[128,128], index: 1, kind: input, shape index: {}]   ;;  %s1094_s2 = inlined_call_operand.vmem [shape: f32[1,128], index: 2, kind: input, shape index: {}]   ;;  %s1095_s3 = inlined_call_operand.hbm [shape: f32[128,128], index: 3, kind: input, shape index: {}]   ;;  %s1096_s4 = inlined_call_operand.vmem [shape: f32[1,128], index: 4, kind: input, shape index: {}]   ;;  %s1097_s5 = inlined_call_operand.hbm [shape: f32[128,128], index: 5, kind: input, shape index: {}]   ;;  %s1098_s6 = inlined_call_operand.vmem [shape: f32[1,128], index: 6, kind: input, shape index: {}]   ;;  %s1099_s7 = inlined_call_operand.hbm [shape: f32[128,128], index: 7, kind: input, shape index: {}]   ;;  %s1100_s8 = inlined_call_operand.vmem [shape: f32[1,128], index: 8, kind: input, shape index: {}]   ;;  %s1101_s9 = inlined_call_operand.vmem [shape: f32[8,768], index: 9, kind: output, shape index: {}]  }
   0x1   :  { %15 = vsyncpa [#allocation5], 0 }
   0x2   :  { %16 = vsyncpa [#allocation8], 0  ;;  %s886_s30 = smov [#allocation4]   ;;  %s887_s11 = smov [#allocation2]  }
   0x3   :  { %s38_s10 = sshll.u32 %s886_s30, 4  ;;  %s24_s12 = sshll.u32 %s887_s11, 4  ;;  %s39_s10 = int_to_ptr.vmem [resolvable:$true] %s38_s10  ;;  %s945_s12 = int_to_ptr.vmem [resolvable:$true] %s24_s12 }
   0x4   :  { %s792_s15 = scalar_lea.hbm %s1095_s3, 2048 }
   0x5   :  { %p793_p0 = scmp.ne.s32.totalorder %s1095_s3, %s792_s15  ;;  %p796_p1 = scmp.lt.u32.totalorder %s792_s15, %s1095_s3 }
   0x7   :  { %p798_p2 = pnand %p796_p1, %p793_p0 }
   0x9   :  { %801 = shalt.err (!%p798_p2)
}
   0xa   :  { %s802_s20 = scalar_lea.vmem %s39_s10, 2048  ;;  %p807_p4 = scmp.lt.s32.totalorder %s39_s10, %s39_s10 }
   0xb   :  { %p803_p3 = scmp.ne.s32.totalorder %s39_s10, %s802_s20  ;;  %p808_p5 = scmp.lt.s32.totalorder %s802_s20, %s802_s20 }
   0xd   :  { %p809_p6 = por %p808_p5, %p807_p4 }
   0xf   :  { %p810_p7 = pnand %p809_p6, %p803_p3 }
  0x11   :  { %813 = shalt.err (!%p810_p7)
}
  0x12   :  { %s888_s21 = smov 128   ;;  %s889_s22 = smov 8  }
  0x13   :  { %44 = dma.hbm_to_vmem [thread:$0]  %s1095_s3, 2048, %s39_s10, [#allocation5], %s888_s21, %s888_s21, %s889_s22  }
  0x14   :  { %s814_s27 = scalar_lea.hbm %s1093_s1, 2048 }
  0x15   :  { %p815_p8 = scmp.ne.s32.totalorder %s1093_s1, %s814_s27  ;;  %p818_p9 = scmp.lt.u32.totalorder %s814_s27, %s1093_s1 }
  0x17   :  { %p820_p10 = pnand %p818_p9, %p815_p8 }
  0x19   :  { %823 = shalt.err (!%p820_p10)
}
  0x1a   :  { %s824_s13 = scalar_lea.vmem %s945_s12, 2048  ;;  %p829_p12 = scmp.lt.s32.totalorder %s945_s12, %s945_s12 }
  0x1b   :  { %p825_p11 = scmp.ne.s32.totalorder %s945_s12, %s824_s13  ;;  %p830_p13 = scmp.lt.s32.totalorder %s824_s13, %s824_s13 }
  0x1d   :  { %p831_p0 = por %p830_p13, %p829_p12 }
  0x1f   :  { %p832_p1 = pnand %p831_p0, %p825_p11 }
  0x21   :  { %835 = shalt.err (!%p832_p1)
}
  0x22   :  { %30 = dma.hbm_to_vmem [thread:$0]  %s1093_s1, 2048, %s945_s12, [#allocation3], %s888_s21, %s888_s21, %s889_s22  }
  0x23   :  { %s890_s14 = smov [#allocation6]   ;;  %s891_s16 = smov [#allocation7]  }
  0x24   :  { %s52_s15 = sshll.u32 %s890_s14, 4  ;;  %s66_s17 = sshll.u32 %s891_s16, 4  ;;  %s53_s15 = int_to_ptr.vmem [resolvable:$true] %s52_s15  ;;  %s982_s17 = int_to_ptr.vmem [resolvable:$true] %s66_s17 }
  0x25   :  { %s836_s20 = scalar_lea.hbm %s1097_s5, 2048 }
  0x26   :  { %p837_p2 = scmp.ne.s32.totalorder %s1097_s5, %s836_s20  ;;  %p840_p3 = scmp.lt.u32.totalorder %s836_s20, %s1097_s5 }
  0x28   :  { %p842_p4 = pnand %p840_p3, %p837_p2 }
  0x2a   :  { %845 = shalt.err (!%p842_p4)
}
  0x2b   :  { %s846_s1 = scalar_lea.vmem %s53_s15, 2048  ;;  %p851_p6 = scmp.lt.s32.totalorder %s53_s15, %s53_s15 }
  0x2c   :  { %p847_p5 = scmp.ne.s32.totalorder %s53_s15, %s846_s1  ;;  %p852_p7 = scmp.lt.s32.totalorder %s846_s1, %s846_s1 }
  0x2e   :  { %p853_p8 = por %p852_p7, %p851_p6 }
  0x30   :  { %p854_p9 = pnand %p853_p8, %p847_p5 }
  0x32   :  { %857 = shalt.err (!%p854_p9)
}
  0x33   :  { %58 = dma.hbm_to_vmem [thread:$0]  %s1097_s5, 2048, %s53_s15, [#allocation5], %s888_s21, %s888_s21, %s889_s22  }
  0x34   :  { %s858_s30 = scalar_lea.hbm %s1099_s7, 2048 }
  0x35   :  { %p859_p10 = scmp.ne.s32.totalorder %s1099_s7, %s858_s30  ;;  %p862_p11 = scmp.lt.u32.totalorder %s858_s30, %s1099_s7 }
  0x37   :  { %p864_p12 = pnand %p862_p11, %p859_p10 }
  0x39   :  { %867 = shalt.err (!%p864_p12)
}
  0x3a   :  { %s868_s14 = scalar_lea.vmem %s982_s17, 2048  ;;  %p873_p0 = scmp.lt.s32.totalorder %s982_s17, %s982_s17 }
  0x3b   :  { %p869_p13 = scmp.ne.s32.totalorder %s982_s17, %s868_s14  ;;  %p874_p1 = scmp.lt.s32.totalorder %s868_s14, %s868_s14 }
  0x3d   :  { %p875_p2 = por %p874_p1, %p873_p0 }
  0x3f   :  { %p876_p3 = pnand %p875_p2, %p869_p13 }
  0x41   :  { %879 = shalt.err (!%p876_p3)
}
  0x42   :  { %72 = dma.hbm_to_vmem [thread:$0]  %s1099_s7, 2048, %s982_s17, [#allocation8], %s888_s21, %s888_s21, %s889_s22  }
  0x43   :  { %880 = dma.done.wait [#allocation3], 2048  }
  0x44   :  { %881 = vsyncadd [#allocation3], 4294965248 }
  0x45   :  { %882 = dma.done.wait [#allocation5], 4096  }
  0x46   :  { %883 = vsyncadd [#allocation5], 4294963200 }
  0x47   :  { %884 = dma.done.wait [#allocation8], 2048  }
  0x48   :  { %885 = vsyncadd [#allocation8], 4294965248  ;;  %v892_v0 = vmov 0.0|0.0   ;;  %vm893_vm0 = vmmov 0   ;;  %v894_v1 = vmov 0.0   ;;  %v88_v2 = vld [vmem:[#allocation2] sm:$0xff] }
  0x49   :  { %687 = vmatprep.subr.bf16.mxu0 %v892_v0  ;;  %579 = vmatprep.mubr.msk.f32.mxu0 %vm893_vm0, %v894_v1  ;;  %v89_v3 = vld [vmem:[#allocation2 + $0x8] sm:$0xff]  ;;  %v90_v4 = vld [vmem:[#allocation2 + $0x10] sm:$0xff]  ;;  %v91_v6 = vld [vmem:[#allocation2 + $0x18] sm:$0xff] }
  0x4a   :  { %711 = vmatprep.subr.bf16.mxu1 %v892_v0  ;;  %614 = vmatprep.mubr.msk.f32.mxu1 %vm893_vm0, %v894_v1  ;;  %v688_v5 = vpack.c.bf16 %v89_v3, %v88_v2  ;;  %v691_v7 = vpack.c.bf16 %v91_v6, %v90_v4  ;;  %v92_v8 = vld [vmem:[#allocation2 + $0x20] sm:$0xff]  ;;  %v93_v9 = vld [vmem:[#allocation2 + $0x28] sm:$0xff]  ;;  %v184_v12 = vld [vmem:[#allocation4 + $0x10] sm:$0xff] }
  0x4b   :  { %v182_v10 = vld [vmem:[#allocation4] sm:$0xff]  ;;  %v183_v11 = vld [vmem:[#allocation4 + $0x8] sm:$0xff]  ;;  %v185_v13 = vld [vmem:[#allocation4 + $0x18] sm:$0xff]  ;;  %v694_v14 = vpack.c.bf16 %v93_v9, %v92_v8 }
  0x4c   :  { %689 = vmatpush3.bf16.msra.mxu0 %v688_v5  ;;  %v712_v15 = vpack.c.bf16 %v183_v11, %v182_v10  ;;  %v94_v16 = vld [vmem:[#allocation2 + $0x30] sm:$0xff]  ;;  %v95_v17 = vld [vmem:[#allocation2 + $0x38] sm:$0xff]  ;;  %v715_v18 = vpack.c.bf16 %v185_v13, %v184_v12  ;;  %v186_v19 = vld [vmem:[#allocation4 + $0x20] sm:$0xff] }
  0x4d   :  { %690 = vmatprep.subr.bf16.mxu0 %v892_v0  ;;  %v187_v20 = vld [vmem:[#allocation4 + $0x28] sm:$0xff]  ;;  %v697_v21 = vpack.c.bf16 %v95_v17, %v94_v16  ;;  %v96_v22 = vld [vmem:[#allocation2 + $0x40] sm:$0xff]  ;;  %v188_v25 = vld [vmem:[#allocation4 + $0x30] sm:$0xff] }
  0x4e   :  { %713 = vmatpush3.bf16.msra.mxu1 %v712_v15  ;;  %v97_v23 = vld [vmem:[#allocation2 + $0x48] sm:$0xff]  ;;  %v718_v24 = vpack.c.bf16 %v187_v20, %v186_v19  ;;  %v189_v26 = vld [vmem:[#allocation4 + $0x38] sm:$0xff]  ;;  %v98_v28 = vld [vmem:[#allocation2 + $0x50] sm:$0xff] }
  0x4f   :  { %714 = vmatprep.subr.bf16.mxu1 %v892_v0  ;;  %v700_v27 = vpack.c.bf16 %v97_v23, %v96_v22  ;;  %v99_v29 = vld [vmem:[#allocation2 + $0x58] sm:$0xff]  ;;  %v721_v30 = vpack.c.bf16 %v189_v26, %v188_v25  ;;  %v190_v31 = vld [vmem:[#allocation4 + $0x40] sm:$0xff]  ;;  %v191_v32 = vld [vmem:[#allocation4 + $0x48] sm:$0xff] }
  0x50   :  { %692 = vmatpush3.bf16.msra.mxu0 %v691_v7  ;;  %v703_v33 = vpack.c.bf16 %v99_v29, %v98_v28  ;;  %v100_v34 = vld [vmem:[#allocation2 + $0x60] sm:$0xff]  ;;  %v101_v35 = vld [vmem:[#allocation2 + $0x68] sm:$0xff]  ;;  %v724_v36 = vpack.c.bf16 %v191_v32, %v190_v31  ;;  %v192_v37 = vld [vmem:[#allocation4 + $0x50] sm:$0xff] }
  0x51   :  { %693 = vmatprep.subr.bf16.mxu0 %v892_v0  ;;  %v193_v38 = vld [vmem:[#allocation4 + $0x58] sm:$0xff]  ;;  %v706_v39 = vpack.c.bf16 %v101_v35, %v100_v34  ;;  %v102_v40 = vld [vmem:[#allocation2 + $0x70] sm:$0xff]  ;;  %v194_v43 = vld [vmem:[#allocation4 + $0x60] sm:$0xff] }
  0x52   :  { %716 = vmatpush3.bf16.msra.mxu1 %v715_v18  ;;  %v103_v41 = vld [vmem:[#allocation2 + $0x78] sm:$0xff]  ;;  %v727_v42 = vpack.c.bf16 %v193_v38, %v192_v37  ;;  %v195_v44 = vld [vmem:[#allocation4 + $0x68] sm:$0xff]  ;;  %v87_v47 = vld [vmem:[%s1092_s0] sm:$0xff] }
  0x53   :  { %717 = vmatprep.subr.bf16.mxu1 %v892_v0  ;;  %v709_v45 = vpack.c.bf16 %v103_v41, %v102_v40  ;;  %v730_v46 = vpack.c.bf16 %v195_v44, %v194_v43  ;;  %v196_v48 = vld [vmem:[#allocation4 + $0x70] sm:$0xff]  ;;  %v197_v49 = vld [vmem:[#allocation4 + $0x78] sm:$0xff]  ;;  %v278_v51 = vld [vmem:[#allocation6] sm:$0xff] }
  0x54   :  { %695 = vmatpush3.bf16.msra.mxu0 %v694_v14  ;;  %v733_v50 = vpack.c.bf16 %v197_v49, %v196_v48  ;;  %v279_v52 = vld [vmem:[#allocation6 + $0x8] sm:$0xff]  ;;  %v280_v53 = vld [vmem:[#allocation6 + $0x10] sm:$0xff]  ;;  %v281_v55 = vld [vmem:[#allocation6 + $0x18] sm:$0xff] }
  0x55   :  { %696 = vmatprep.subr.bf16.mxu0 %v892_v0  ;;  %v736_v54 = vpack.c.bf16 %v279_v52, %v278_v51  ;;  %v739_v56 = vpack.c.bf16 %v281_v55, %v280_v53  ;;  %v282_v57 = vld [vmem:[#allocation6 + $0x20] sm:$0xff]  ;;  %v283_v58 = vld [vmem:[#allocation6 + $0x28] sm:$0xff]  ;;  %v284_v60 = vld [vmem:[#allocation6 + $0x30] sm:$0xff] }
  0x56   :  { %719 = vmatpush3.bf16.msra.mxu1 %v718_v24  ;;  %v742_v59 = vpack.c.bf16 %v283_v58, %v282_v57  ;;  %v285_v61 = vld [vmem:[#allocation6 + $0x38] sm:$0xff]  ;;  %v286_v63 = vld [vmem:[#allocation6 + $0x40] sm:$0xff]  ;;  %v287_v2 = vld [vmem:[#allocation6 + $0x48] sm:$0xff] }
  0x57   :  { %720 = vmatprep.subr.bf16.mxu1 %v892_v0  ;;  %v745_v62 = vpack.c.bf16 %v285_v61, %v284_v60  ;;  %v748_v3 = vpack.c.bf16 %v287_v2, %v286_v63  ;;  %v288_v4 = vld [vmem:[#allocation6 + $0x50] sm:$0xff]  ;;  %v289_v5 = vld [vmem:[#allocation6 + $0x58] sm:$0xff]  ;;  %v290_v7 = vld [vmem:[#allocation6 + $0x60] sm:$0xff] }
  0x58   :  { %698 = vmatpush3.bf16.msra.mxu0 %v697_v21  ;;  %v751_v6 = vpack.c.bf16 %v289_v5, %v288_v4  ;;  %v291_v8 = vld [vmem:[#allocation6 + $0x68] sm:$0xff]  ;;  %v475_v10 = vld [vmem:[%s1094_s2] ss:$0 sm:$0xff]  ;;  %v292_v15 = vld [vmem:[#allocation6 + $0x70] sm:$0xff] }
  0x59   :  { %699 = vmatprep.subr.bf16.mxu0 %v892_v0  ;;  %v754_v9 = vpack.c.bf16 %v291_v8, %v290_v7  ;;  %v293_v16 = vld [vmem:[#allocation6 + $0x78] sm:$0xff]  ;;  %v374_v18 = vld [vmem:[#allocation7] sm:$0xff]  ;;  %v375_v19 = vld [vmem:[#allocation7 + $0x8] sm:$0xff] }
  0x5a   :  { %722 = vmatpush3.bf16.msra.mxu1 %v721_v30  ;;  %v757_v17 = vpack.c.bf16 %v293_v16, %v292_v15  ;;  %v376_v20 = vld [vmem:[#allocation7 + $0x10] sm:$0xff]  ;;  %v760_v21 = vpack.c.bf16 %v375_v19, %v374_v18  ;;  %v377_v22 = vld [vmem:[#allocation7 + $0x18] sm:$0xff]  ;;  %v378_v24 = vld [vmem:[#allocation7 + $0x20] sm:$0xff] }
  0x5b   :  { %723 = vmatprep.subr.bf16.mxu1 %v892_v0  ;;  %v763_v23 = vpack.c.bf16 %v377_v22, %v376_v20  ;;  %v379_v25 = vld [vmem:[#allocation7 + $0x28] sm:$0xff]  ;;  %v382_v29 = vld [vmem:[#allocation7 + $0x40] sm:$0xff]  ;;  %v384_v32 = vld [vmem:[#allocation7 + $0x50] sm:$0xff] }
  0x5c   :  { %701 = vmatpush3.bf16.msra.mxu0 %v700_v27  ;;  %v766_v26 = vpack.c.bf16 %v379_v25, %v378_v24  ;;  %v381_v27 = vld [vmem:[#allocation7 + $0x38] sm:$0xff]  ;;  %v383_v30 = vld [vmem:[#allocation7 + $0x48] sm:$0xff]  ;;  %v386_v35 = vld [vmem:[#allocation7 + $0x60] sm:$0xff] }
  0x5d   :  { %702 = vmatprep.subr.bf16.mxu0 %v892_v0  ;;  %v772_v31 = vpack.c.bf16 %v383_v30, %v382_v29  ;;  %v476_v38 = vld [vmem:[%s1096_s4] ss:$0 sm:$0xff]  ;;  %v388_v43 = vld [vmem:[#allocation7 + $0x70] sm:$0xff]  ;;  %v389_v44 = vld [vmem:[#allocation7 + $0x78] sm:$0xff] }
  0x5e   :  { %725 = vmatpush3.bf16.msra.mxu1 %v724_v36  ;;  %v387_v36 = vld [vmem:[#allocation7 + $0x68] sm:$0xff]  ;;  %v478_v49 = vld [vmem:[%s1100_s8] ss:$0 sm:$0xff] }
  0x5f   :  { %726 = vmatprep.subr.bf16.mxu1 %v892_v0  ;;  %v778_v37 = vpack.c.bf16 %v387_v36, %v386_v35 }
  0x60   :  { %704 = vmatpush3.bf16.msra.mxu0 %v703_v33  ;;  %v385_v33 = vld [vmem:[#allocation7 + $0x58] sm:$0xff] }
  0x61   :  { %705 = vmatprep.subr.bf16.mxu0 %v892_v0  ;;  %v775_v34 = vpack.c.bf16 %v385_v33, %v384_v32 }
  0x62   :  { %728 = vmatpush3.bf16.msra.mxu1 %v727_v42 }
  0x63   :  { %729 = vmatprep.subr.bf16.mxu1 %v892_v0 }
  0x64   :  { %707 = vmatpush3.bf16.msra.mxu0 %v706_v39 }
  0x65   :  { %708 = vmatprep.subr.bf16.mxu0 %v892_v0 }
  0x66   :  { %731 = vmatpush3.bf16.msra.mxu1 %v730_v46 }
  0x67   :  { %732 = vmatprep.subr.bf16.mxu1 %v892_v0 }
  0x68   :  { %710 = vmatpush3.bf16.msra.mxu0 %v709_v45  ;;  %v477_v45 = vld [vmem:[%s1098_s6] ss:$0 sm:$0xff] }
  0x69   :  { %735 = vmatprep.subr.bf16.mxu0 %v892_v0 }
  0x6a   :  { %734 = vmatpush3.bf16.msra.mxu1 %v733_v50 }
  0x6b   :  { %580 = vmatmul.mubr.f32.vlgmr.msra.gmra.mrb[0].mxu0 %v87_v47  ;;  %759 = vmatprep.subr.bf16.mxu1 %v892_v0 }
  0x6c   :  { %649 = vmatprep.mubr.msk.f32.mxu0 %vm893_vm0, %v894_v1  ;;  %737 = vmatpush3.bf16.msra.mxu0 %v736_v54 }
  0x6d   :  { %738 = vmatprep.subr.bf16.mxu0 %v892_v0 }
  0x70   :  { %740 = vmatpush3.bf16.msra.mxu0 %v739_v56 }
  0x71   :  { %741 = vmatprep.subr.bf16.mxu0 %v892_v0 }
  0x74   :  { %743 = vmatpush3.bf16.msra.mxu0 %v742_v59 }
  0x75   :  { %744 = vmatprep.subr.bf16.mxu0 %v892_v0 }
  0x78   :  { %746 = vmatpush3.bf16.msra.mxu0 %v745_v62 }
  0x79   :  { %747 = vmatprep.subr.bf16.mxu0 %v892_v0 }
  0x7c   :  { %749 = vmatpush3.bf16.msra.mxu0 %v748_v3 }
  0x7d   :  { %750 = vmatprep.subr.bf16.mxu0 %v892_v0 }
  0x80   :  { %752 = vmatpush3.bf16.msra.mxu0 %v751_v6 }
  0x81   :  { %753 = vmatprep.subr.bf16.mxu0 %v892_v0 }
  0x84   :  { %755 = vmatpush3.bf16.msra.mxu0 %v754_v9 }
  0x85   :  { %756 = vmatprep.subr.bf16.mxu0 %v892_v0 }
  0x88   :  { %758 = vmatpush3.bf16.msra.mxu0 %v757_v17 }
 0x13e   :  { %v177_v11 = vpop.f32.mrb[0].mxu0 }
 0x13f   :  { %v178_v12 = vadd.f32 %v475_v10, %v177_v11  ;;  %v581_v13 = vpop.f32.mrb[1].mxu0 }
 0x141   :  { %181 = vst [vmem:[%s1101_s9] sm:$0xff] %v178_v12  ;;  %v199_v14 = vmax.f32 %v178_v12, 0.0 }
 0x143   :  { %200 = vst [vmem:[%s1101_s9 + $0x8] sm:$0xff] %v199_v14  ;;  %615 = vmatmul.mubr.f32.vlgmr.msra.gmra.mrb[0].mxu1 %v199_v14 }
 0x144   :  { %684 = vmatprep.mubr.msk.f32.mxu1 %vm893_vm0, %v894_v1  ;;  %761 = vmatpush3.bf16.msra.mxu1 %v760_v21  ;;  %v380_v1 = vld [vmem:[#allocation7 + $0x30] sm:$0xff] }
 0x145   :  { %762 = vmatprep.subr.bf16.mxu1 %v892_v0  ;;  %v769_v28 = vpack.c.bf16 %v381_v27, %v380_v1 }
 0x148   :  { %764 = vmatpush3.bf16.msra.mxu1 %v763_v23 }
 0x149   :  { %765 = vmatprep.subr.bf16.mxu1 %v892_v0 }
 0x14c   :  { %767 = vmatpush3.bf16.msra.mxu1 %v766_v26 }
 0x14d   :  { %768 = vmatprep.subr.bf16.mxu1 %v892_v0 }
 0x150   :  { %770 = vmatpush3.bf16.msra.mxu1 %v769_v28 }
 0x151   :  { %771 = vmatprep.subr.bf16.mxu1 %v892_v0 }
 0x154   :  { %773 = vmatpush3.bf16.msra.mxu1 %v772_v31 }
 0x155   :  { %774 = vmatprep.subr.bf16.mxu1 %v892_v0 }
 0x158   :  { %776 = vmatpush3.bf16.msra.mxu1 %v775_v34 }
 0x159   :  { %777 = vmatprep.subr.bf16.mxu1 %v892_v0 }
 0x15c   :  { %779 = vmatpush3.bf16.msra.mxu1 %v778_v37 }
 0x15d   :  { %780 = vmatprep.subr.bf16.mxu1 %v892_v0  ;;  %v781_v0 = vpack.c.bf16 %v389_v44, %v388_v43 }
 0x160   :  { %782 = vmatpush3.bf16.msra.mxu1 %v781_v0 }
 0x216   :  { %v273_v39 = vpop.f32.mrb[0].mxu1 }
 0x217   :  { %v274_v40 = vadd.f32 %v476_v38, %v273_v39  ;;  %v616_v41 = vpop.f32.mrb[1].mxu1 }
 0x219   :  { %277 = vst [vmem:[%s1101_s9 + $0x10] sm:$0xff] %v274_v40  ;;  %v295_v42 = vmax.f32 %v274_v40, 0.0 }
 0x21b   :  { %296 = vst [vmem:[%s1101_s9 + $0x18] sm:$0xff] %v295_v42  ;;  %650 = vmatmul.mubr.f32.vlgmr.msra.gmra.mrb[2].mxu0 %v295_v42 }
 0x2ee   :  { %v369_v46 = vpop.f32.mrb[2].mxu0 }
 0x2ef   :  { %v370_v47 = vadd.f32 %v477_v45, %v369_v46  ;;  %v651_v48 = vpop.f32.mrb[3].mxu0 }
 0x2f1   :  { %373 = vst [vmem:[%s1101_s9 + $0x20] sm:$0xff] %v370_v47  ;;  %685 = vmatmul.mubr.f32.vlgmr.msra.gmra.mrb[2].mxu1 %v370_v47 }
 0x3c4   :  { %v463_v50 = vpop.f32.mrb[2].mxu1 }
 0x3c5   :  { %v464_v51 = vadd.f32 %v478_v49, %v463_v50  ;;  %v686_v52 = vpop.f32.mrb[3].mxu1 }
 0x3c7   :  { %467 = vst [vmem:[%s1101_s9 + $0x28] sm:$0xff] %v464_v51 }
 0x3c8   :  { %472 = vsyncpa [#allocation3], 1 }
 0x3c9   :  { %473 = vsyncpa [#allocation5], 1 }
 0x3ca   :  { %474 = vsyncpa [#allocation8], 1 }

</bundles_post_ra>
